<compile_context>
chip_gen: v6e
topology: v6e:2x2x1
jax: 0.10.0
libtpu: 0.0.40
codegen_flags: <defaults>
</compile_context>

<pallas_src>
import functools

import jax
import jax.numpy as jnp
from jax.experimental import pallas as pl
from jax.experimental.pallas import tpu as pltpu

T_KD = 20.0    # KL_divergence temperature
T_THR = 2.0    # Threshold_weights3 temperature
NEG_BIG = -1e30


def _dyn_mt3_kernel(tgt_ref, o1_ref, o2_ref, o3_ref, s_ref, out_ref, *, n_valid):
    f32 = jnp.float32
    o1 = o1_ref[...].astype(f32)
    o2 = o2_ref[...].astype(f32)
    o3 = o3_ref[...].astype(f32)
    s = s_ref[...].astype(f32)
    tgt = tgt_ref[...]                                    # (TILE_N, 1) int32

    tile_n, c = o1.shape
    lane = jax.lax.broadcasted_iota(jnp.int32, (tile_n, c), 1)
    tgt_mask = lane == tgt                                # per-row one-hot (bool)

    # Valid-row mask (replaces wrapper-side padding): global row index < n.
    row = jax.lax.broadcasted_iota(jnp.int32, (tile_n, 1), 0)
    valid = (pl.program_id(0) * tile_n + row) < n_valid   # (TILE_N, 1) bool

    mimic = (o1 + o2 + o3) * (1.0 / 3.0)

    def margin_and_target(logits):
        """d = (max - second_max) if the target lane holds the max, else 0.

        second_max is the max over non-target lanes, which exactly matches the
        torch.sort tie semantics (tied maxima -> second == max -> d == 0)."""
        row_max = jnp.max(logits, axis=-1, keepdims=True)
        tgt_logit = jnp.sum(jnp.where(tgt_mask, logits, 0.0), axis=-1, keepdims=True)
        second = jnp.max(jnp.where(tgt_mask, NEG_BIG, logits), axis=-1, keepdims=True)
        d = jnp.where(tgt_logit == row_max, row_max - second, 0.0)
        return d, tgt_logit, row_max

    d1, t1, rm1 = margin_and_target(o1)
    d2, t2, rm2 = margin_and_target(o2)
    d3, t3, rm3 = margin_and_target(o3)
    dm, tm, _ = margin_and_target(mimic)

    # Softmax over the 4 teacher margins per row (temperature T_THR).
    # Exact reciprocal on the tiny (TILE_N,1) denominator so sum(thr)==1, which
    # the algebraic refactor below relies on.
    m = jnp.maximum(jnp.maximum(d1, d2), jnp.maximum(d3, dm)) * (1.0 / T_THR)
    e1 = jnp.exp(d1 * (1.0 / T_THR) - m)
    e2 = jnp.exp(d2 * (1.0 / T_THR) - m)
    e3 = jnp.exp(d3 * (1.0 / T_THR) - m)
    em = jnp.exp(dm * (1.0 / T_THR) - m)
    inv_den = 1.0 / (e1 + e2 + e3 + em)
    thr1, thr2, thr3, thrm = e1 * inv_den, e2 * inv_den, e3 * inv_den, em * inv_den

    # CrossEntropy(student, target) per row.
    s_max = jnp.max(s, axis=-1, keepdims=True)
    s_lse = jnp.log(jnp.sum(jnp.exp(s - s_max), axis=-1, keepdims=True)) + s_max
    s_tgt = jnp.sum(jnp.where(tgt_mask, s, 0.0), axis=-1, keepdims=True)
    ce = s_lse - s_tgt                                    # (TILE_N, 1)

    # log_softmax(student / T_KD)
    sT = s * (1.0 / T_KD)
    sT_max = jnp.max(sT, axis=-1, keepdims=True)
    sT_lse = jnp.log(jnp.sum(jnp.exp(sT - sT_max), axis=-1, keepdims=True)) + sT_max
    s_logsoft = sT - sT_lse

    def kd_loss(teacher):
        # -sum(softmax(t/T) * log_softmax(s/T)) * T^2 with a per-row exact
        # normalisation (no NxC division).
        tT = teacher * (1.0 / T_KD)
        t_max = jnp.max(tT, axis=-1, keepdims=True)
        t_exp = jnp.exp(tT - t_max)
        num = jnp.sum(t_exp * s_logsoft, axis=-1, keepdims=True)
        den = jnp.sum(t_exp, axis=-1, keepdims=True)
        return -(num / den) * (T_KD * T_KD)

    kd1, kd2, kd3, kdm = kd_loss(o1), kd_loss(o2), kd_loss(o3), kd_loss(mimic)

    # loss_row = ce + (0.8/max_preds) * G   with   G = sum_i thr_i*t_i*(kd_i-ce)
    g = (thr1 * t1 * (kd1 - ce) + thr2 * t2 * (kd2 - ce)
         + thr3 * t3 * (kd3 - ce) + thrm * tm * (kdm - ce))   # (TILE_N, 1)

    # Per-tile partials (invalid rows masked *before* any reduction).
    ce_sum = jnp.sum(jnp.where(valid, ce, 0.0))
    g_sum = jnp.sum(jnp.where(valid, g, 0.0))
    t_rowmax = jnp.maximum(jnp.maximum(rm1, rm2), rm3)
    t_max_tile = jnp.max(jnp.where(valid, t_rowmax, NEG_BIG))

    # Lane-dense (8,128) slab write: lane 0 = sum(ce), 1 = sum(G), 2 = tile max.
    lane_out = jax.lax.broadcasted_iota(jnp.int32, (8, 128), 1)
    slab = jnp.where(lane_out == 0, ce_sum,
                     jnp.where(lane_out == 1, g_sum,
                               jnp.where(lane_out == 2, t_max_tile, 0.0)))
    out_ref[0] = slab.astype(f32)


def _round_up(x, m):
    return (x + m - 1) // m * m


def _vmem_capacity_bytes():
    default_cap = 64 * 1024 * 1024          # conservative: v7x per-TC VMEM
    try:
        info = pltpu.get_tpu_info()
        cap = int(getattr(info, "vmem_capacity_bytes", 0)) or default_cap
    except Exception:
        cap = default_cap
    return cap


def _choose_tiling(n, c, itemsize):
    """Even batch split with generation-aware VMEM sizing."""
    cap = _vmem_capacity_bytes()
    # Per-row VMEM: 4 logit streams x 2 pipeline buffers + ~14 live C-wide f32
    # intermediates inside the body (upcasts, mimic, exp/where temporaries).
    bytes_per_row = 4 * 2 * c * itemsize + 14 * c * 4

    if n < 8:
        # Single full-extent block (block dim == array dim is always legal).
        return max(n, 1), 1, 16 * 1024 * 1024

    n8 = _round_up(n, 8)
    budget = int(cap * 0.55)
    t = max(8, (budget // bytes_per_row) // 8 * 8)
    # Even split of the batch; keep >= 2 grid steps when the batch allows it
    # (pipelining everywhere, megacore sharding on v7x).
    min_tiles = 2 if n8 > 8 else 1
    num_tiles = max(min_tiles, pl.cdiv(n8, t))
    tile_n = _round_up(pl.cdiv(n8, num_tiles), 8)
    num_tiles = pl.cdiv(n8, tile_n)

    vmem_limit = min(int(cap * 0.75), tile_n * bytes_per_row + (8 << 20))
    vmem_limit = max(vmem_limit, 16 << 20)
    return tile_n, num_tiles, vmem_limit


def dynamic_multiteacher3(outputs1, outputs2, outputs3, out_s, targets):
    """Scalar loss with the same semantics as the PyTorch Dynamic_MultiTeacher3."""
    n, c = outputs1.shape
    itemsize = jnp.dtype(outputs1.dtype).itemsize
    tile_n, num_tiles, vmem_limit = _choose_tiling(n, c, itemsize)

    tgt2d = targets.astype(jnp.int32).reshape(n, 1)

    logit_spec = pl.BlockSpec((tile_n, c), lambda i: (i, 0))
    col_spec = pl.BlockSpec((tile_n, 1), lambda i: (i, 0))
    out_spec = pl.BlockSpec((1, 8, 128), lambda i: (i, 0, 0))

    kernel = functools.partial(_dyn_mt3_kernel, n_valid=n)

    partials = pl.pallas_call(
        kernel,
        out_shape=jax.ShapeDtypeStruct((num_tiles, 8, 128), jnp.float32),
        grid_spec=pltpu.PrefetchScalarGridSpec(
            num_scalar_prefetch=0,
            grid=(num_tiles,),
            in_specs=[col_spec, logit_spec, logit_spec, logit_spec, logit_spec],
            out_specs=out_spec),
        compiler_params=pltpu.CompilerParams(
            dimension_semantics=("parallel",),
            vmem_limit_bytes=int(vmem_limit)),
    )(tgt2d, outputs1, outputs2, outputs3, out_s)

    ce_total = jnp.sum(partials[:, 0, 0])
    g_total = jnp.sum(partials[:, 0, 1])
    max_preds = jnp.max(partials[:, 0, 2])

    # loss = mean_rows( ce + (0.8/max_preds) * G ); division by max_preds is
    # unguarded to exactly mirror the PyTorch reference behaviour.
    return (ce_total + (0.8 / max_preds) * g_total) / n


def _reference(outputs1, outputs2, outputs3, out_s, targets):
    """Pure-JAX reference mirroring the PyTorch forward (for validation)."""
    n, c = outputs1.shape
    oh = jax.nn.one_hot(targets, c, dtype=jnp.float32)
    mimic = (outputs1 + outputs2 + outputs3) / 3.0
    max_preds = jnp.max(jnp.stack([outputs1, outputs2, outputs3]))

    def margin(logits):
        srt = jnp.sort(logits, axis=-1)[:, ::-1]
        tgt = jnp.take_along_axis(logits, targets[:, None], axis=-1)[:, 0]
        return jnp.where(tgt == srt[:, 0], srt[:, 0] - srt[:, 1], 0.0), tgt

    d1, t1 = margin(outputs1)
    d2, t2 = margin(outputs2)
    d3, t3 = margin(outputs3)
    dm, tm = margin(mimic)
    thr = jax.nn.softmax(jnp.stack([d1, d2, d3, dm], axis=-1) / T_THR, axis=-1)

    ce = -jnp.sum(jax.nn.log_softmax(out_s, axis=-1) * oh, axis=-1)
    s_ls = jax.nn.log_softmax(out_s / T_KD, axis=-1)

    def kd(t):
        return -jnp.sum(jax.nn.softmax(t / T_KD, axis=-1) * s_ls, axis=-1) * T_KD * T_KD

    def mix(tgt, kdv):
        w = tgt / max_preds
        return (1.0 - 0.8 * w) * ce + 0.8 * w * kdv

    losses = jnp.stack([mix(t1, kd(outputs1)), mix(t2, kd(outputs2)),
                        mix(t3, kd(outputs3)), mix(tm, kd(mimic))], axis=-1)
    return jnp.mean(jnp.sum(thr * losses, axis=-1))


if __name__ == "__main__":
    key = jax.random.PRNGKey(0)
    k1, k2, k3, k4, k5 = jax.random.split(key, 5)
    N, C = 8, 16                       # batch=8 samples, 16 classes
    outputs1 = jax.random.normal(k1, (N, C), dtype=jnp.float32) * 3.0
    outputs2 = jax.random.normal(k2, (N, C), dtype=jnp.float32) * 3.0
    outputs3 = jax.random.normal(k3, (N, C), dtype=jnp.float32) * 3.0
    out_s = jax.random.normal(k4, (N, C), dtype=jnp.float32) * 3.0
    targets = jax.random.randint(k5, (N,), 0, C, dtype=jnp.int32)

    loss = dynamic_multiteacher3(outputs1, outputs2, outputs3, out_s, targets)
    loss = jax.block_until_ready(loss)

    ref = _reference(outputs1, outputs2, outputs3, out_s, targets)
    assert jnp.allclose(loss, ref, rtol=1e-3, atol=1e-3), (loss, ref)
    print("KERNEL_OK")
</pallas_src>

<mosaic_0001>
module attributes {stable_mosaic.version = 11 : i64} {
  func.func @_dyn_mt3_kernel(%arg0: i32, %arg1: memref<8x1xi32, #tpu.memory_space<vmem>>, %arg2: memref<8x16xf32, #tpu.memory_space<vmem>>, %arg3: memref<8x16xf32, #tpu.memory_space<vmem>>, %arg4: memref<8x16xf32, #tpu.memory_space<vmem>>, %arg5: memref<8x16xf32, #tpu.memory_space<vmem>>, %arg6: memref<1x8x128xf32, #tpu.memory_space<vmem>>) attributes {dimension_semantics = [#tpu.dimension_semantics<parallel>], iteration_bounds = array<i64: 1>, scalar_prefetch = 0 : i64, scratch_operands = 0 : i64, tpu.core_type = #tpu.core_type<tc>, window_params = [{transform_indices = @transform_0, window_bounds = array<i64: 8, 1>}, {transform_indices = @transform_1, window_bounds = array<i64: 8, 16>}, {transform_indices = @transform_2, window_bounds = array<i64: 8, 16>}, {transform_indices = @transform_3, window_bounds = array<i64: 8, 16>}, {transform_indices = @transform_4, window_bounds = array<i64: 8, 16>}, {transform_indices = @transform_5, window_bounds = array<i64: 1, 8, 128>}]} {
    %c0 = arith.constant 0 : index
    %c0_0 = arith.constant 0 : index
    %0 = vector.load %arg2[%c0, %c0_0] : memref<8x16xf32, #tpu.memory_space<vmem>>, vector<8x16xf32>
    %c0_1 = arith.constant 0 : index
    %c0_2 = arith.constant 0 : index
    %1 = vector.load %arg3[%c0_1, %c0_2] : memref<8x16xf32, #tpu.memory_space<vmem>>, vector<8x16xf32>
    %c0_3 = arith.constant 0 : index
    %c0_4 = arith.constant 0 : index
    %2 = vector.load %arg4[%c0_3, %c0_4] : memref<8x16xf32, #tpu.memory_space<vmem>>, vector<8x16xf32>
    %c0_5 = arith.constant 0 : index
    %c0_6 = arith.constant 0 : index
    %3 = vector.load %arg5[%c0_5, %c0_6] : memref<8x16xf32, #tpu.memory_space<vmem>>, vector<8x16xf32>
    %c0_7 = arith.constant 0 : index
    %c0_8 = arith.constant 0 : index
    %4 = vector.load %arg1[%c0_7, %c0_8] : memref<8x1xi32, #tpu.memory_space<vmem>>, vector<8x1xi32>
    %5 = tpu.iota {dimensions = array<i32: 1>} : vector<8x16xi32>
    %6 = vector.broadcast %4 : vector<8x1xi32> to vector<8x16xi32>
    %7 = arith.cmpi eq, %5, %6 : vector<8x16xi32>
    %8 = tpu.iota {dimensions = array<i32: 0>} : vector<8x1xi32>
    %c8_i32 = arith.constant 8 : i32
    %9 = arith.muli %arg0, %c8_i32 : i32
    %10 = vector.broadcast %9 : i32 to vector<8x1xi32>
    %11 = arith.addi %10, %8 : vector<8x1xi32>
    %c8_i32_9 = arith.constant 8 : i32
    %12 = vector.broadcast %c8_i32_9 : i32 to vector<8x1xi32>
    %13 = arith.cmpi slt, %11, %12 : vector<8x1xi32>
    %14 = arith.addf %0, %1 : vector<8x16xf32>
    %15 = arith.addf %14, %2 : vector<8x16xf32>
    %cst = arith.constant 0.333333343 : f32
    %16 = vector.broadcast %cst : f32 to vector<8x16xf32>
    %17 = arith.mulf %15, %16 : vector<8x16xf32>
    %cst_10 = arith.constant dense<0xFF800000> : vector<8xf32>
    %18 = vector.multi_reduction <maximumf>, %0, %cst_10 [1] : vector<8x16xf32> to vector<8xf32>
    %19 = vector.shape_cast %18 : vector<8xf32> to vector<8x1xf32>
    %cst_11 = arith.constant 0.000000e+00 : f32
    %20 = vector.broadcast %cst_11 : f32 to vector<8x16xf32>
    %21 = arith.select %7, %0, %20 : vector<8x16xi1>, vector<8x16xf32>
    %cst_12 = arith.constant dense<0.000000e+00> : vector<8xf32>
    %22 = vector.multi_reduction <add>, %21, %cst_12 [1] : vector<8x16xf32> to vector<8xf32>
    %23 = vector.shape_cast %22 : vector<8xf32> to vector<8x1xf32>
    %cst_13 = arith.constant -1.000000e+30 : f32
    %24 = vector.broadcast %cst_13 : f32 to vector<8x16xf32>
    %25 = arith.select %7, %24, %0 : vector<8x16xi1>, vector<8x16xf32>
    %cst_14 = arith.constant dense<0xFF800000> : vector<8xf32>
    %26 = vector.multi_reduction <maximumf>, %25, %cst_14 [1] : vector<8x16xf32> to vector<8xf32>
    %27 = vector.shape_cast %26 : vector<8xf32> to vector<8x1xf32>
    %28 = arith.cmpf oeq, %23, %19 : vector<8x1xf32>
    %29 = arith.subf %19, %27 : vector<8x1xf32>
    %cst_15 = arith.constant 0.000000e+00 : f32
    %30 = vector.broadcast %cst_15 : f32 to vector<8x1xf32>
    %31 = arith.select %28, %29, %30 : vector<8x1xi1>, vector<8x1xf32>
    %cst_16 = arith.constant dense<0xFF800000> : vector<8xf32>
    %32 = vector.multi_reduction <maximumf>, %1, %cst_16 [1] : vector<8x16xf32> to vector<8xf32>
    %33 = vector.shape_cast %32 : vector<8xf32> to vector<8x1xf32>
    %cst_17 = arith.constant 0.000000e+00 : f32
    %34 = vector.broadcast %cst_17 : f32 to vector<8x16xf32>
    %35 = arith.select %7, %1, %34 : vector<8x16xi1>, vector<8x16xf32>
    %cst_18 = arith.constant dense<0.000000e+00> : vector<8xf32>
    %36 = vector.multi_reduction <add>, %35, %cst_18 [1] : vector<8x16xf32> to vector<8xf32>
    %37 = vector.shape_cast %36 : vector<8xf32> to vector<8x1xf32>
    %cst_19 = arith.constant -1.000000e+30 : f32
    %38 = vector.broadcast %cst_19 : f32 to vector<8x16xf32>
    %39 = arith.select %7, %38, %1 : vector<8x16xi1>, vector<8x16xf32>
    %cst_20 = arith.constant dense<0xFF800000> : vector<8xf32>
    %40 = vector.multi_reduction <maximumf>, %39, %cst_20 [1] : vector<8x16xf32> to vector<8xf32>
    %41 = vector.shape_cast %40 : vector<8xf32> to vector<8x1xf32>
    %42 = arith.cmpf oeq, %37, %33 : vector<8x1xf32>
    %43 = arith.subf %33, %41 : vector<8x1xf32>
    %cst_21 = arith.constant 0.000000e+00 : f32
    %44 = vector.broadcast %cst_21 : f32 to vector<8x1xf32>
    %45 = arith.select %42, %43, %44 : vector<8x1xi1>, vector<8x1xf32>
    %cst_22 = arith.constant dense<0xFF800000> : vector<8xf32>
    %46 = vector.multi_reduction <maximumf>, %2, %cst_22 [1] : vector<8x16xf32> to vector<8xf32>
    %47 = vector.shape_cast %46 : vector<8xf32> to vector<8x1xf32>
    %cst_23 = arith.constant 0.000000e+00 : f32
    %48 = vector.broadcast %cst_23 : f32 to vector<8x16xf32>
    %49 = arith.select %7, %2, %48 : vector<8x16xi1>, vector<8x16xf32>
    %cst_24 = arith.constant dense<0.000000e+00> : vector<8xf32>
    %50 = vector.multi_reduction <add>, %49, %cst_24 [1] : vector<8x16xf32> to vector<8xf32>
    %51 = vector.shape_cast %50 : vector<8xf32> to vector<8x1xf32>
    %cst_25 = arith.constant -1.000000e+30 : f32
    %52 = vector.broadcast %cst_25 : f32 to vector<8x16xf32>
    %53 = arith.select %7, %52, %2 : vector<8x16xi1>, vector<8x16xf32>
    %cst_26 = arith.constant dense<0xFF800000> : vector<8xf32>
    %54 = vector.multi_reduction <maximumf>, %53, %cst_26 [1] : vector<8x16xf32> to vector<8xf32>
    %55 = vector.shape_cast %54 : vector<8xf32> to vector<8x1xf32>
    %56 = arith.cmpf oeq, %51, %47 : vector<8x1xf32>
    %57 = arith.subf %47, %55 : vector<8x1xf32>
    %cst_27 = arith.constant 0.000000e+00 : f32
    %58 = vector.broadcast %cst_27 : f32 to vector<8x1xf32>
    %59 = arith.select %56, %57, %58 : vector<8x1xi1>, vector<8x1xf32>
    %cst_28 = arith.constant dense<0xFF800000> : vector<8xf32>
    %60 = vector.multi_reduction <maximumf>, %17, %cst_28 [1] : vector<8x16xf32> to vector<8xf32>
    %61 = vector.shape_cast %60 : vector<8xf32> to vector<8x1xf32>
    %cst_29 = arith.constant 0.000000e+00 : f32
    %62 = vector.broadcast %cst_29 : f32 to vector<8x16xf32>
    %63 = arith.select %7, %17, %62 : vector<8x16xi1>, vector<8x16xf32>
    %cst_30 = arith.constant dense<0.000000e+00> : vector<8xf32>
    %64 = vector.multi_reduction <add>, %63, %cst_30 [1] : vector<8x16xf32> to vector<8xf32>
    %65 = vector.shape_cast %64 : vector<8xf32> to vector<8x1xf32>
    %cst_31 = arith.constant -1.000000e+30 : f32
    %66 = vector.broadcast %cst_31 : f32 to vector<8x16xf32>
    %67 = arith.select %7, %66, %17 : vector<8x16xi1>, vector<8x16xf32>
    %cst_32 = arith.constant dense<0xFF800000> : vector<8xf32>
    %68 = vector.multi_reduction <maximumf>, %67, %cst_32 [1] : vector<8x16xf32> to vector<8xf32>
    %69 = vector.shape_cast %68 : vector<8xf32> to vector<8x1xf32>
    %70 = arith.cmpf oeq, %65, %61 : vector<8x1xf32>
    %71 = arith.subf %61, %69 : vector<8x1xf32>
    %cst_33 = arith.constant 0.000000e+00 : f32
    %72 = vector.broadcast %cst_33 : f32 to vector<8x1xf32>
    %73 = arith.select %70, %71, %72 : vector<8x1xi1>, vector<8x1xf32>
    %74 = arith.maximumf %31, %45 : vector<8x1xf32>
    %75 = arith.maximumf %59, %73 : vector<8x1xf32>
    %76 = arith.maximumf %74, %75 : vector<8x1xf32>
    %cst_34 = arith.constant 5.000000e-01 : f32
    %77 = vector.broadcast %cst_34 : f32 to vector<8x1xf32>
    %78 = arith.mulf %76, %77 : vector<8x1xf32>
    %cst_35 = arith.constant 5.000000e-01 : f32
    %79 = vector.broadcast %cst_35 : f32 to vector<8x1xf32>
    %80 = arith.mulf %31, %79 : vector<8x1xf32>
    %81 = arith.subf %80, %78 : vector<8x1xf32>
    %82 = math.exp %81 : vector<8x1xf32>
    %cst_36 = arith.constant 5.000000e-01 : f32
    %83 = vector.broadcast %cst_36 : f32 to vector<8x1xf32>
    %84 = arith.mulf %45, %83 : vector<8x1xf32>
    %85 = arith.subf %84, %78 : vector<8x1xf32>
    %86 = math.exp %85 : vector<8x1xf32>
    %cst_37 = arith.constant 5.000000e-01 : f32
    %87 = vector.broadcast %cst_37 : f32 to vector<8x1xf32>
    %88 = arith.mulf %59, %87 : vector<8x1xf32>
    %89 = arith.subf %88, %78 : vector<8x1xf32>
    %90 = math.exp %89 : vector<8x1xf32>
    %cst_38 = arith.constant 5.000000e-01 : f32
    %91 = vector.broadcast %cst_38 : f32 to vector<8x1xf32>
    %92 = arith.mulf %73, %91 : vector<8x1xf32>
    %93 = arith.subf %92, %78 : vector<8x1xf32>
    %94 = math.exp %93 : vector<8x1xf32>
    %95 = arith.addf %82, %86 : vector<8x1xf32>
    %96 = arith.addf %95, %90 : vector<8x1xf32>
    %97 = arith.addf %96, %94 : vector<8x1xf32>
    %cst_39 = arith.constant 1.000000e+00 : f32
    %98 = vector.broadcast %cst_39 : f32 to vector<8x1xf32>
    %99 = arith.divf %98, %97 : vector<8x1xf32>
    %100 = arith.mulf %82, %99 : vector<8x1xf32>
    %101 = arith.mulf %86, %99 : vector<8x1xf32>
    %102 = arith.mulf %90, %99 : vector<8x1xf32>
    %103 = arith.mulf %94, %99 : vector<8x1xf32>
    %cst_40 = arith.constant dense<0xFF800000> : vector<8xf32>
    %104 = vector.multi_reduction <maximumf>, %3, %cst_40 [1] : vector<8x16xf32> to vector<8xf32>
    %105 = vector.shape_cast %104 : vector<8xf32> to vector<8x1xf32>
    %106 = vector.broadcast %105 : vector<8x1xf32> to vector<8x16xf32>
    %107 = arith.subf %3, %106 : vector<8x16xf32>
    %108 = math.exp %107 : vector<8x16xf32>
    %cst_41 = arith.constant dense<0.000000e+00> : vector<8xf32>
    %109 = vector.multi_reduction <add>, %108, %cst_41 [1] : vector<8x16xf32> to vector<8xf32>
    %110 = vector.shape_cast %109 : vector<8xf32> to vector<8x1xf32>
    %111 = math.log %110 : vector<8x1xf32>
    %112 = arith.addf %111, %105 : vector<8x1xf32>
    %cst_42 = arith.constant 0.000000e+00 : f32
    %113 = vector.broadcast %cst_42 : f32 to vector<8x16xf32>
    %114 = arith.select %7, %3, %113 : vector<8x16xi1>, vector<8x16xf32>
    %cst_43 = arith.constant dense<0.000000e+00> : vector<8xf32>
    %115 = vector.multi_reduction <add>, %114, %cst_43 [1] : vector<8x16xf32> to vector<8xf32>
    %116 = vector.shape_cast %115 : vector<8xf32> to vector<8x1xf32>
    %117 = arith.subf %112, %116 : vector<8x1xf32>
    %cst_44 = arith.constant 5.000000e-02 : f32
    %118 = vector.broadcast %cst_44 : f32 to vector<8x16xf32>
    %119 = arith.mulf %3, %118 : vector<8x16xf32>
    %cst_45 = arith.constant dense<0xFF800000> : vector<8xf32>
    %120 = vector.multi_reduction <maximumf>, %119, %cst_45 [1] : vector<8x16xf32> to vector<8xf32>
    %121 = vector.shape_cast %120 : vector<8xf32> to vector<8x1xf32>
    %122 = vector.broadcast %121 : vector<8x1xf32> to vector<8x16xf32>
    %123 = arith.subf %119, %122 : vector<8x16xf32>
    %124 = math.exp %123 : vector<8x16xf32>
    %cst_46 = arith.constant dense<0.000000e+00> : vector<8xf32>
    %125 = vector.multi_reduction <add>, %124, %cst_46 [1] : vector<8x16xf32> to vector<8xf32>
    %126 = vector.shape_cast %125 : vector<8xf32> to vector<8x1xf32>
    %127 = math.log %126 : vector<8x1xf32>
    %128 = arith.addf %127, %121 : vector<8x1xf32>
    %129 = vector.broadcast %128 : vector<8x1xf32> to vector<8x16xf32>
    %130 = arith.subf %119, %129 : vector<8x16xf32>
    %cst_47 = arith.constant 5.000000e-02 : f32
    %131 = vector.broadcast %cst_47 : f32 to vector<8x16xf32>
    %132 = arith.mulf %0, %131 : vector<8x16xf32>
    %cst_48 = arith.constant dense<0xFF800000> : vector<8xf32>
    %133 = vector.multi_reduction <maximumf>, %132, %cst_48 [1] : vector<8x16xf32> to vector<8xf32>
    %134 = vector.shape_cast %133 : vector<8xf32> to vector<8x1xf32>
    %135 = vector.broadcast %134 : vector<8x1xf32> to vector<8x16xf32>
    %136 = arith.subf %132, %135 : vector<8x16xf32>
    %137 = math.exp %136 : vector<8x16xf32>
    %138 = arith.mulf %137, %130 : vector<8x16xf32>
    %cst_49 = arith.constant dense<0.000000e+00> : vector<8xf32>
    %139 = vector.multi_reduction <add>, %138, %cst_49 [1] : vector<8x16xf32> to vector<8xf32>
    %140 = vector.shape_cast %139 : vector<8xf32> to vector<8x1xf32>
    %cst_50 = arith.constant dense<0.000000e+00> : vector<8xf32>
    %141 = vector.multi_reduction <add>, %137, %cst_50 [1] : vector<8x16xf32> to vector<8xf32>
    %142 = vector.shape_cast %141 : vector<8xf32> to vector<8x1xf32>
    %143 = arith.divf %140, %142 : vector<8x1xf32>
    %cst_51 = arith.constant 0.000000e+00 : f32
    %144 = vector.broadcast %cst_51 : f32 to vector<8x1xf32>
    %145 = arith.subf %144, %143 : vector<8x1xf32>
    %cst_52 = arith.constant 4.000000e+02 : f32
    %146 = vector.broadcast %cst_52 : f32 to vector<8x1xf32>
    %147 = arith.mulf %145, %146 : vector<8x1xf32>
    %cst_53 = arith.constant 5.000000e-02 : f32
    %148 = vector.broadcast %cst_53 : f32 to vector<8x16xf32>
    %149 = arith.mulf %1, %148 : vector<8x16xf32>
    %cst_54 = arith.constant dense<0xFF800000> : vector<8xf32>
    %150 = vector.multi_reduction <maximumf>, %149, %cst_54 [1] : vector<8x16xf32> to vector<8xf32>
    %151 = vector.shape_cast %150 : vector<8xf32> to vector<8x1xf32>
    %152 = vector.broadcast %151 : vector<8x1xf32> to vector<8x16xf32>
    %153 = arith.subf %149, %152 : vector<8x16xf32>
    %154 = math.exp %153 : vector<8x16xf32>
    %155 = arith.mulf %154, %130 : vector<8x16xf32>
    %cst_55 = arith.constant dense<0.000000e+00> : vector<8xf32>
    %156 = vector.multi_reduction <add>, %155, %cst_55 [1] : vector<8x16xf32> to vector<8xf32>
    %157 = vector.shape_cast %156 : vector<8xf32> to vector<8x1xf32>
    %cst_56 = arith.constant dense<0.000000e+00> : vector<8xf32>
    %158 = vector.multi_reduction <add>, %154, %cst_56 [1] : vector<8x16xf32> to vector<8xf32>
    %159 = vector.shape_cast %158 : vector<8xf32> to vector<8x1xf32>
    %160 = arith.divf %157, %159 : vector<8x1xf32>
    %cst_57 = arith.constant 0.000000e+00 : f32
    %161 = vector.broadcast %cst_57 : f32 to vector<8x1xf32>
    %162 = arith.subf %161, %160 : vector<8x1xf32>
    %cst_58 = arith.constant 4.000000e+02 : f32
    %163 = vector.broadcast %cst_58 : f32 to vector<8x1xf32>
    %164 = arith.mulf %162, %163 : vector<8x1xf32>
    %cst_59 = arith.constant 5.000000e-02 : f32
    %165 = vector.broadcast %cst_59 : f32 to vector<8x16xf32>
    %166 = arith.mulf %2, %165 : vector<8x16xf32>
    %cst_60 = arith.constant dense<0xFF800000> : vector<8xf32>
    %167 = vector.multi_reduction <maximumf>, %166, %cst_60 [1] : vector<8x16xf32> to vector<8xf32>
    %168 = vector.shape_cast %167 : vector<8xf32> to vector<8x1xf32>
    %169 = vector.broadcast %168 : vector<8x1xf32> to vector<8x16xf32>
    %170 = arith.subf %166, %169 : vector<8x16xf32>
    %171 = math.exp %170 : vector<8x16xf32>
    %172 = arith.mulf %171, %130 : vector<8x16xf32>
    %cst_61 = arith.constant dense<0.000000e+00> : vector<8xf32>
    %173 = vector.multi_reduction <add>, %172, %cst_61 [1] : vector<8x16xf32> to vector<8xf32>
    %174 = vector.shape_cast %173 : vector<8xf32> to vector<8x1xf32>
    %cst_62 = arith.constant dense<0.000000e+00> : vector<8xf32>
    %175 = vector.multi_reduction <add>, %171, %cst_62 [1] : vector<8x16xf32> to vector<8xf32>
    %176 = vector.shape_cast %175 : vector<8xf32> to vector<8x1xf32>
    %177 = arith.divf %174, %176 : vector<8x1xf32>
    %cst_63 = arith.constant 0.000000e+00 : f32
    %178 = vector.broadcast %cst_63 : f32 to vector<8x1xf32>
    %179 = arith.subf %178, %177 : vector<8x1xf32>
    %cst_64 = arith.constant 4.000000e+02 : f32
    %180 = vector.broadcast %cst_64 : f32 to vector<8x1xf32>
    %181 = arith.mulf %179, %180 : vector<8x1xf32>
    %cst_65 = arith.constant 5.000000e-02 : f32
    %182 = vector.broadcast %cst_65 : f32 to vector<8x16xf32>
    %183 = arith.mulf %17, %182 : vector<8x16xf32>
    %cst_66 = arith.constant dense<0xFF800000> : vector<8xf32>
    %184 = vector.multi_reduction <maximumf>, %183, %cst_66 [1] : vector<8x16xf32> to vector<8xf32>
    %185 = vector.shape_cast %184 : vector<8xf32> to vector<8x1xf32>
    %186 = vector.broadcast %185 : vector<8x1xf32> to vector<8x16xf32>
    %187 = arith.subf %183, %186 : vector<8x16xf32>
    %188 = math.exp %187 : vector<8x16xf32>
    %189 = arith.mulf %188, %130 : vector<8x16xf32>
    %cst_67 = arith.constant dense<0.000000e+00> : vector<8xf32>
    %190 = vector.multi_reduction <add>, %189, %cst_67 [1] : vector<8x16xf32> to vector<8xf32>
    %191 = vector.shape_cast %190 : vector<8xf32> to vector<8x1xf32>
    %cst_68 = arith.constant dense<0.000000e+00> : vector<8xf32>
    %192 = vector.multi_reduction <add>, %188, %cst_68 [1] : vector<8x16xf32> to vector<8xf32>
    %193 = vector.shape_cast %192 : vector<8xf32> to vector<8x1xf32>
    %194 = arith.divf %191, %193 : vector<8x1xf32>
    %cst_69 = arith.constant 0.000000e+00 : f32
    %195 = vector.broadcast %cst_69 : f32 to vector<8x1xf32>
    %196 = arith.subf %195, %194 : vector<8x1xf32>
    %cst_70 = arith.constant 4.000000e+02 : f32
    %197 = vector.broadcast %cst_70 : f32 to vector<8x1xf32>
    %198 = arith.mulf %196, %197 : vector<8x1xf32>
    %199 = arith.mulf %100, %23 : vector<8x1xf32>
    %200 = arith.subf %147, %117 : vector<8x1xf32>
    %201 = arith.mulf %199, %200 : vector<8x1xf32>
    %202 = arith.mulf %101, %37 : vector<8x1xf32>
    %203 = arith.subf %164, %117 : vector<8x1xf32>
    %204 = arith.mulf %202, %203 : vector<8x1xf32>
    %205 = arith.addf %201, %204 : vector<8x1xf32>
    %206 = arith.mulf %102, %51 : vector<8x1xf32>
    %207 = arith.subf %181, %117 : vector<8x1xf32>
    %208 = arith.mulf %206, %207 : vector<8x1xf32>
    %209 = arith.addf %205, %208 : vector<8x1xf32>
    %210 = arith.mulf %103, %65 : vector<8x1xf32>
    %211 = arith.subf %198, %117 : vector<8x1xf32>
    %212 = arith.mulf %210, %211 : vector<8x1xf32>
    %213 = arith.addf %209, %212 : vector<8x1xf32>
    %cst_71 = arith.constant 0.000000e+00 : f32
    %214 = vector.broadcast %cst_71 : f32 to vector<8x1xf32>
    %215 = arith.select %13, %117, %214 : vector<8x1xi1>, vector<8x1xf32>
    %216 = vector.shape_cast %215 : vector<8x1xf32> to vector<1x8x1xf32>
    %cst_72 = arith.constant dense<0.000000e+00> : vector<1xf32>
    %217 = vector.multi_reduction <add>, %216, %cst_72 [1, 2] : vector<1x8x1xf32> to vector<1xf32>
    %218 = vector.shape_cast %217 : vector<1xf32> to vector<1x1x1xf32>
    %219 = vector.extract %218[0, 0, 0] : f32 from vector<1x1x1xf32>
    %cst_73 = arith.constant 0.000000e+00 : f32
    %220 = vector.broadcast %cst_73 : f32 to vector<8x1xf32>
    %221 = arith.select %13, %213, %220 : vector<8x1xi1>, vector<8x1xf32>
    %222 = vector.shape_cast %221 : vector<8x1xf32> to vector<1x8x1xf32>
    %cst_74 = arith.constant dense<0.000000e+00> : vector<1xf32>
    %223 = vector.multi_reduction <add>, %222, %cst_74 [1, 2] : vector<1x8x1xf32> to vector<1xf32>
    %224 = vector.shape_cast %223 : vector<1xf32> to vector<1x1x1xf32>
    %225 = vector.extract %224[0, 0, 0] : f32 from vector<1x1x1xf32>
    %226 = arith.maximumf %19, %33 : vector<8x1xf32>
    %227 = arith.maximumf %226, %47 : vector<8x1xf32>
    %cst_75 = arith.constant -1.000000e+30 : f32
    %228 = vector.broadcast %cst_75 : f32 to vector<8x1xf32>
    %229 = arith.select %13, %227, %228 : vector<8x1xi1>, vector<8x1xf32>
    %230 = vector.shape_cast %229 : vector<8x1xf32> to vector<1x8x1xf32>
    %cst_76 = arith.constant dense<0xFF800000> : vector<1xf32>
    %231 = vector.multi_reduction <maximumf>, %230, %cst_76 [1, 2] : vector<1x8x1xf32> to vector<1xf32>
    %232 = vector.shape_cast %231 : vector<1xf32> to vector<1x1x1xf32>
    %233 = vector.extract %232[0, 0, 0] : f32 from vector<1x1x1xf32>
    %234 = tpu.iota {dimensions = array<i32: 1>} : vector<8x128xi32>
    %c0_i32 = arith.constant 0 : i32
    %235 = vector.broadcast %c0_i32 : i32 to vector<8x128xi32>
    %236 = arith.cmpi eq, %234, %235 : vector<8x128xi32>
    %c1_i32 = arith.constant 1 : i32
    %237 = vector.broadcast %c1_i32 : i32 to vector<8x128xi32>
    %238 = arith.cmpi eq, %234, %237 : vector<8x128xi32>
    %c2_i32 = arith.constant 2 : i32
    %239 = vector.broadcast %c2_i32 : i32 to vector<8x128xi32>
    %240 = arith.cmpi eq, %234, %239 : vector<8x128xi32>
    %cst_77 = arith.constant 0.000000e+00 : f32
    %241 = vector.broadcast %233 : f32 to vector<8x128xf32>
    %242 = vector.broadcast %cst_77 : f32 to vector<8x128xf32>
    %243 = arith.select %240, %241, %242 : vector<8x128xi1>, vector<8x128xf32>
    %244 = vector.broadcast %225 : f32 to vector<8x128xf32>
    %245 = arith.select %238, %244, %243 : vector<8x128xi1>, vector<8x128xf32>
    %246 = vector.broadcast %219 : f32 to vector<8x128xf32>
    %247 = arith.select %236, %246, %245 : vector<8x128xi1>, vector<8x128xf32>
    %c0_78 = arith.constant 0 : index
    %c0_79 = arith.constant 0 : index
    %c0_80 = arith.constant 0 : index
    %248 = vector.load %arg6[%c0_78, %c0_79, %c0_80] : memref<1x8x128xf32, #tpu.memory_space<vmem>>, vector<1x8x128xf32>
    %249 = vector.shape_cast %248 : vector<1x8x128xf32> to vector<8x128xf32>
    %250 = vector.shape_cast %247 : vector<8x128xf32> to vector<1x8x128xf32>
    tpu.vector_store %arg6[%c0_78, %c0_79, %c0_80], %250 {strides = array<i32>} : memref<1x8x128xf32, #tpu.memory_space<vmem>>, vector<1x8x128xf32>,
    return
  }
  func.func @transform_0(%arg0: i32) -> (i32, i32) {
    %c0_i32 = arith.constant 0 : i32
    %c0_i32_0 = arith.constant 0 : i32
    return %arg0, %c0_i32 : i32, i32
  }
  func.func @transform_1(%arg0: i32) -> (i32, i32) {
    %c0_i32 = arith.constant 0 : i32
    %c0_i32_0 = arith.constant 0 : i32
    return %arg0, %c0_i32 : i32, i32
  }
  func.func @transform_2(%arg0: i32) -> (i32, i32) {
    %c0_i32 = arith.constant 0 : i32
    %c0_i32_0 = arith.constant 0 : i32
    return %arg0, %c0_i32 : i32, i32
  }
  func.func @transform_3(%arg0: i32) -> (i32, i32) {
    %c0_i32 = arith.constant 0 : i32
    %c0_i32_0 = arith.constant 0 : i32
    return %arg0, %c0_i32 : i32, i32
  }
  func.func @transform_4(%arg0: i32) -> (i32, i32) {
    %c0_i32 = arith.constant 0 : i32
    %c0_i32_0 = arith.constant 0 : i32
    return %arg0, %c0_i32 : i32, i32
  }
  func.func @transform_5(%arg0: i32) -> (i32, i32, i32) {
    %c0_i32 = arith.constant 0 : i32
    %c0_i32_0 = arith.constant 0 : i32
    %c0_i32_1 = arith.constant 0 : i32
    return %arg0, %c0_i32, %c0_i32_0 : i32, i32, i32
  }
}

</mosaic_0001>

<bundles_post_ra>
// kernel: tpu_custom_call.1
= control target key start
LH: loop header
LB: loop body
LE: loop exit
PB: predicated region body
PF: predicated region fallthrough
CT: control target
= control target key end

     0   :  { %10 = vsyncpa [#allocation3], 0  ;;  %s632_s0 = inlined_call_operand.vmem [shape: s32[8,1], index: 0, kind: input, shape index: {}]   ;;  %s633_s1 = inlined_call_operand.vmem [shape: f32[8,16], index: 1, kind: input, shape index: {}]   ;;  %s634_s2 = inlined_call_operand.hbm [shape: f32[8,16], index: 2, kind: input, shape index: {}]   ;;  %s635_s3 = inlined_call_operand.hbm [shape: f32[8,16], index: 3, kind: input, shape index: {}]   ;;  %s636_s4 = inlined_call_operand.vmem [shape: f32[8,16], index: 4, kind: input, shape index: {}]   ;;  %s637_s5 = inlined_call_operand.hbm [shape: f32[1,8,128], index: 5, kind: output, shape index: {}]  }
   0x1   :  { %11 = vsyncpa [#allocation6], 0 }
   0x2   :  { %12 = vsyncpa [#allocation4], 0  ;;  %s439_s18 = smov [#allocation2]   ;;  %s440_s20 = smov [#allocation5]  }
   0x3   :  { %s23_s19 = sshll.u32 %s439_s18, 4  ;;  %s33_s21 = sshll.u32 %s440_s20, 4  ;;  %s24_s19 = int_to_ptr.vmem [resolvable:$true] %s23_s19  ;;  %s34_s21 = int_to_ptr.vmem [resolvable:$true] %s33_s21 }
   0x4   :  { %s381_s22 = scalar_lea.vmem %s24_s19, 128  ;;  %p386_p1 = scmp.lt.s32.totalorder %s24_s19, %s24_s19 }
   0x5   :  { %p382_p0 = scmp.ne.s32.totalorder %s24_s19, %s381_s22  ;;  %p387_p2 = scmp.lt.s32.totalorder %s381_s22, %s381_s22 }
   0x7   :  { %p388_p3 = por %p387_p2, %p386_p1 }
   0x9   :  { %p389_p4 = pnand %p388_p3, %p382_p0 }
   0xb   :  { %392 = shalt.err (!%p389_p4)
}
   0xc   :  { %26 = dma.hbm_to_vmem [thread:$0]  %s634_s2, 128, %s24_s19, [#allocation3]  }
   0xd   :  { %s401_s25 = scalar_lea.vmem %s34_s21, 128  ;;  %p406_p6 = scmp.lt.s32.totalorder %s34_s21, %s34_s21 }
   0xe   :  { %p402_p5 = scmp.ne.s32.totalorder %s34_s21, %s401_s25  ;;  %p407_p7 = scmp.lt.s32.totalorder %s401_s25, %s401_s25 }
  0x10   :  { %p408_p8 = por %p407_p7, %p406_p6 }
  0x12   :  { %p409_p9 = pnand %p408_p8, %p402_p5 }
  0x14   :  { %412 = shalt.err (!%p409_p9)
}
  0x15   :  { %36 = dma.hbm_to_vmem [thread:$0]  %s635_s3, 128, %s34_s21, [#allocation6]  }
  0x16   :  { %433 = dma.done.wait [#allocation3], 128  }
  0x17   :  { %434 = vsyncadd [#allocation3], 4294967168 }
  0x18   :  { %435 = dma.done.wait [#allocation6], 128  }
  0x19   :  { %436 = vsyncadd [#allocation6], 4294967168  ;;  %v441_v0 = vmov 0   ;;  %v482_v1 = vld [vmem:[%s636_s4] sm:$0xff]  ;;  %vm65_vm0 = vcmask 130048   ;;  %v501_v8 = vld [vmem:[#allocation2] sm:$0xff]  ;;  %v50_v25 = vlaneseq }
  0x1a   :  { %338 = vset.pattern.permute.xlu0 %v441_v0  ;;  %v485_v2 = vmul.f32 0.05, %v482_v1  ;;  %v151_v3 = vsel %vm65_vm0, %v482_v1, -inf  ;;  %v494_v5 = vld [vmem:[%s633_s1] sm:$0xff]  ;;  %v504_v9 = vmul.f32 0.05, %v501_v8 }
  0x1b   :  { %152 = vmax.xlane.f32.xlu1 %v151_v3  ;;  %v497_v6 = vmul.f32 0.05, %v494_v5  ;;  %v506_v10 = vld [vmem:[#allocation5] sm:$0xff]  ;;  %v62_v11 = vadd.f32 %v501_v8, %v494_v5  ;;  %v49_v17 = vld [vmem:[%s632_s0] sm:$0xff]  ;;  %v533_v27 = vand.u32 127, %v50_v25  ;;  %v66_v33 = vsel %vm65_vm0, %v494_v5, -inf }
  0x1c   :  { %v169_v4 = vsel %vm65_vm0, %v485_v2, -inf  ;;  %v218_v12 = vmul.f32 0.05, %v506_v10  ;;  %v201_v13 = vsel %vm65_vm0, %v504_v9, -inf  ;;  %v80_v39 = vsel %vm65_vm0, %v501_v8, -inf  ;;  %s442_s7 = smov [#allocation7]  }
  0x1d   :  { %170 = vmax.xlane.f32.xlu0 %v169_v4  ;;  %v183_v7 = vsel %vm65_vm0, %v497_v6, -inf  ;;  %v63_v14 = vadd.f32 %v62_v11, %v506_v10  ;;  %v94_v42 = vsel %vm65_vm0, %v506_v10, -inf  ;;  %vm270_vm6 = vcmask 7168   ;;  %s318_s8 = sshll.u32 %s442_s7, 4  ;;  %s319_s8 = int_to_ptr.vmem [resolvable:$true] %s318_s8 }
  0x1e   :  { %v219_v15 = vsel %vm65_vm0, %v218_v12, -inf  ;;  %vm304_vm7 = vcmp.eq.s32.totalorder %v533_v27, 2  ;;  %vm303_vm8 = vcmp.eq.s32.totalorder %v533_v27, 1  ;;  %vm302_vm9 = vcmp.eq.s32.totalorder %v533_v27, 0  ;;  %s413_s9 = scalar_lea.vmem %s319_s8, 128  ;;  %p418_p11 = scmp.lt.s32.totalorder %s319_s8, %s319_s8 }
  0x1f   :  { %184 = vmax.xlane.f32.xlu1 %v183_v7  ;;  %v515_v16 = vmul.f32 0.33333334, %v63_v14  ;;  %p414_p10 = scmp.ne.s32.totalorder %s319_s8, %s413_s9  ;;  %p419_p12 = scmp.lt.s32.totalorder %s413_s9, %s413_s9 }
  0x21   :  { %v521_v18 = vmul.f32 0.05, %v515_v16  ;;  %v108_v20 = vsel %vm65_vm0, %v515_v16, -inf  ;;  %p420_p13 = por %p419_p12, %p418_p11 }
  0x23   :  { %202 = vmax.xlane.f32.xlu1 %v201_v13  ;;  %v237_v19 = vsel %vm65_vm0, %v521_v18, -inf  ;;  %p421_p0 = pnand %p420_p13, %p414_p10 }
  0x27   :  { %220 = vmax.xlane.f32.xlu1 %v219_v15 }
  0x2b   :  { %238 = vmax.xlane.f32.xlu1 %v237_v19 }
  0x33   :  { %53 = vperm.xlu0 %338, %v49_v17  }
  0x52   :  { %109 = vmax.xlane.f32.xlu0 %v108_v20 }
  0xa4   :  { %v531_v24 = vpop.xlane.xlu1 %152 }
  0xa5   :  { %v154_v47 = vsub.f32 %v482_v1, %v531_v24 }
  0xa6   :  { %v527_v21 = vpop.xlane.xlu0 %170 }
  0xa7   :  { %v172_v22 = vsub.f32 %v485_v2, %v527_v21  ;;  %v155_v49 = vmul.f32 1.442695, %v154_v47 }
  0xa8   :  { %v185_v26 = vpop.xlane.xlu1 %184 }
  0xa9   :  { %v173_v23 = vmul.f32 1.442695, %v172_v22  ;;  %v186_v51 = vsub.f32 %v497_v6, %v185_v26 }
  0xab   :  { %339 = vpow2.f32 %v173_v23  ;;  %v187_v54 = vmul.f32 1.442695, %v186_v51 }
  0xac   :  { %v203_v29 = vpop.xlane.xlu1 %202 }
  0xad   :  { %v204_v55 = vsub.f32 %v504_v9, %v203_v29 }
  0xae   :  { %v54_v28 = vpop.permute.xlu0 %53 }
  0xaf   :  { %vm537_vm1 = vcmp.eq.s32.totalorder %v533_v27, %v54_v28  ;;  %v205_v59 = vmul.f32 1.442695, %v204_v55 }
  0xb0   :  { %v221_v34 = vpop.xlane.xlu1 %220  ;;  %v73_v35 = vsel %vm537_vm1, -1e+30, %v494_v5  ;;  %v87_v40 = vsel %vm537_vm1, -1e+30, %v501_v8  ;;  %v101_v43 = vsel %vm537_vm1, -1e+30, %v506_v10 }
  0xb1   :  { %v222_v36 = vsub.f32 %v218_v12, %v221_v34  ;;  %v74_v38 = vsel %vm65_vm0, %v73_v35, -inf  ;;  %v88_v41 = vsel %vm65_vm0, %v87_v40, -inf  ;;  %v102_v46 = vsel %vm65_vm0, %v101_v43, -inf }
  0xb2   :  { %v115_v48 = vsel %vm537_vm1, -1e+30, %v515_v16  ;;  %v69_v52 = vsel %vm537_vm1, %v494_v5, 0.0  ;;  %v83_v56 = vsel %vm537_vm1, %v501_v8, 0.0  ;;  %v97_v61 = vsel %vm537_vm1, %v506_v10, 0.0 }
  0xb3   :  { %v223_v37 = vmul.f32 1.442695, %v222_v36  ;;  %v116_v50 = vsel %vm65_vm0, %v115_v48, -inf  ;;  %v70_v53 = vsel %vm65_vm0, %v69_v52, 0.0  ;;  %v84_v58 = vsel %vm65_vm0, %v83_v56, 0.0 }
  0xb4   :  { %v239_v57 = vpop.xlane.xlu1 %238  ;;  %v98_v62 = vsel %vm65_vm0, %v97_v61, 0.0  ;;  %v111_v0 = vsel %vm537_vm1, %v515_v16, 0.0 }
  0xb5   :  { %341 = vpow2.f32 %v223_v37  ;;  %v240_v60 = vsub.f32 %v521_v18, %v239_v57  ;;  %v112_v3 = vsel %vm65_vm0, %v111_v0, 0.0 }
  0xb6   :  { %343 = vpow2.f32 %v155_v49 }
  0xb7   :  { %345 = vpow2.f32 %v187_v54  ;;  %v241_v63 = vmul.f32 1.442695, %v240_v60 }
  0xb8   :  { %v340_v30 = vpop.eup %339  ;;  %347 = vpow2.f32 %v205_v59 }
  0xb9   :  { %v175_v31 = vsel %vm65_vm0, %v340_v30, 0.0  ;;  %349 = vpow2.f32 %v241_v63 }
  0xba   :  { %176 = vadd.xlane.f32.xlu1 %v175_v31 }
  0xbe   :  { %67 = vmax.xlane.f32.xlu1 %v66_v33  ;;  %v163_v33 = vsel %vm537_vm1, %v482_v1, 0.0 }
  0xc2   :  { %75 = vmax.xlane.f32.xlu1 %v74_v38  ;;  %v558_v44 = vpop.eup %341 }
  0xc3   :  { %v229_v45 = vsel %vm65_vm0, %v558_v44, 0.0  ;;  %v344_v4 = vpop.eup %343 }
  0xc4   :  { %230 = vadd.xlane.f32.xlu0 %v229_v45  ;;  %v157_v5 = vsel %vm65_vm0, %v344_v4, 0.0  ;;  %v346_v6 = vpop.eup %345 }
  0xc5   :  { %v193_v7 = vsel %vm65_vm0, %v346_v6, 0.0  ;;  %v348_v8 = vpop.eup %347 }
  0xc6   :  { %81 = vmax.xlane.f32.xlu1 %v80_v39  ;;  %v211_v9 = vsel %vm65_vm0, %v348_v8, 0.0  ;;  %v350_v10 = vpop.eup %349 }
  0xc7   :  { %v247_v11 = vsel %vm65_vm0, %v350_v10, 0.0 }
  0xca   :  { %89 = vmax.xlane.f32.xlu1 %v88_v41 }
  0xce   :  { %95 = vmax.xlane.f32.xlu1 %v94_v42 }
  0xd2   :  { %103 = vmax.xlane.f32.xlu1 %v102_v46 }
  0xd6   :  { %117 = vmax.xlane.f32.xlu1 %v116_v50 }
  0xda   :  { %71 = vadd.xlane.f32.xlu1 %v70_v53 }
  0xdb   :  { %v110_v32 = vpop.xlane.xlu0 %109 }
  0xde   :  { %85 = vadd.xlane.f32.xlu1 %v84_v58 }
  0xe2   :  { %99 = vadd.xlane.f32.xlu1 %v98_v62 }
  0xe6   :  { %113 = vadd.xlane.f32.xlu1 %v112_v3 }
  0xea   :  { %158 = vadd.xlane.f32.xlu1 %v157_v5 }
  0xee   :  { %194 = vadd.xlane.f32.xlu1 %v193_v7 }
  0xf2   :  { %212 = vadd.xlane.f32.xlu1 %v211_v9 }
  0xf6   :  { %248 = vadd.xlane.f32.xlu1 %v247_v11 }
 0x143   :  { %v177_v12 = vpop.xlane.xlu1 %176 }
 0x144   :  { %351 = vlog2.f32 %v177_v12 }
 0x147   :  { %v68_v13 = vpop.xlane.xlu1 %67 }
 0x14b   :  { %v76_v14 = vpop.xlane.xlu1 %75 }
 0x14c   :  { %v78_v41 = vsub.f32 %v68_v13, %v76_v14 }
 0x14f   :  { %v82_v15 = vpop.xlane.xlu1 %81 }
 0x150   :  { %v292_v16 = vmax.f32 %v68_v13, %v82_v15 }
 0x151   :  { %v352_v17 = vpop.eup %351 }
 0x152   :  { %v179_v18 = vmul.f32 0.6931472, %v352_v17 }
 0x153   :  { %v90_v19 = vpop.xlane.xlu1 %89 }
 0x154   :  { %v180_v20 = vadd.f32 %v179_v18, %v527_v21  ;;  %v164_v21 = vsel %vm65_vm0, %v163_v33, 0.0  ;;  %v92_v42 = vsub.f32 %v82_v15, %v90_v19 }
 0x156   :  { %v181_v22 = vsub.f32 %v485_v2, %v180_v20 }
 0x157   :  { %v96_v23 = vpop.xlane.xlu1 %95 }
 0x158   :  { %v594_v25 = vmax.f32 %v292_v16, %v96_v23  ;;  %v207_v26 = vmul.f32 %v348_v8, %v181_v22  ;;  %v189_v28 = vmul.f32 %v346_v6, %v181_v22  ;;  %v225_v31 = vmul.f32 %v558_v44, %v181_v22 }
 0x159   :  { %v243_v34 = vmul.f32 %v350_v10, %v181_v22 }
 0x15a   :  { %v208_v29 = vsel %vm65_vm0, %v207_v26, 0.0  ;;  %v190_v30 = vsel %vm65_vm0, %v189_v28, 0.0  ;;  %v226_v2 = vsel %vm65_vm0, %v225_v31, 0.0 }
 0x15b   :  { %209 = vadd.xlane.f32.xlu1 %v208_v29  ;;  %191 = vadd.xlane.f32.xlu0 %v190_v30  ;;  %v244_v35 = vsel %vm65_vm0, %v243_v34, 0.0  ;;  %v104_v36 = vpop.xlane.xlu1 %103 }
 0x15c   :  { %v106_v43 = vsub.f32 %v96_v23, %v104_v36 }
 0x15f   :  { %165 = vadd.xlane.f32.xlu1 %v164_v21  ;;  %227 = vadd.xlane.f32.xlu0 %v226_v2  ;;  %v118_v37 = vpop.xlane.xlu1 %117 }
 0x160   :  { %v120_v44 = vsub.f32 %v110_v32, %v118_v37 }
 0x163   :  { %245 = vadd.xlane.f32.xlu0 %v244_v35  ;;  %v605_v38 = vpop.xlane.xlu1 %71 }
 0x164   :  { %vm77_vm2 = vcmp.eq.f32.partialorder %v605_v38, %v68_v13  ;;  %v231_v13 = vpop.xlane.xlu0 %230 }
 0x165   :  { %v79_v45 = vsel %vm77_vm2, %v78_v41, 0.0 }
 0x166   :  { %v126_v52 = vmul.f32 0.5, %v79_v45 }
 0x167   :  { %v607_v39 = vpop.xlane.xlu1 %85 }
 0x168   :  { %vm91_vm3 = vcmp.eq.f32.partialorder %v607_v39, %v82_v15 }
 0x169   :  { %v93_v46 = vsel %vm91_vm3, %v92_v42, 0.0 }
 0x16a   :  { %v122_v49 = vmax.f32 %v79_v45, %v93_v46  ;;  %v130_v54 = vmul.f32 0.5, %v93_v46 }
 0x16b   :  { %v609_v40 = vpop.xlane.xlu1 %99 }
 0x16c   :  { %vm105_vm4 = vcmp.eq.f32.partialorder %v609_v40, %v96_v23 }
 0x16d   :  { %v107_v47 = vsel %vm105_vm4, %v106_v43, 0.0 }
 0x16e   :  { %v134_v56 = vmul.f32 0.5, %v107_v47 }
 0x16f   :  { %v611_v1 = vpop.xlane.xlu1 %113 }
 0x170   :  { %vm119_vm5 = vcmp.eq.f32.partialorder %v611_v1, %v110_v32 }
 0x171   :  { %v121_v48 = vsel %vm119_vm5, %v120_v44, 0.0 }
 0x172   :  { %v123_v50 = vmax.f32 %v107_v47, %v121_v48  ;;  %v138_v61 = vmul.f32 0.5, %v121_v48 }
 0x173   :  { %v159_v5 = vpop.xlane.xlu1 %158 }
 0x174   :  { %v124_v51 = vmax.f32 %v122_v49, %v123_v50 }
 0x176   :  { %v125_v53 = vmul.f32 0.5, %v124_v51 }
 0x177   :  { %v195_v8 = vpop.xlane.xlu1 %194 }
 0x178   :  { %v127_v55 = vsub.f32 %v126_v52, %v125_v53  ;;  %v131_v57 = vsub.f32 %v130_v54, %v125_v53  ;;  %v135_v60 = vsub.f32 %v134_v56, %v125_v53  ;;  %v139_v63 = vsub.f32 %v138_v61, %v125_v53 }
 0x17a   :  { %v128_v58 = vmul.f32 1.442695, %v127_v55  ;;  %v132_v59 = vmul.f32 1.442695, %v131_v57  ;;  %v136_v62 = vmul.f32 1.442695, %v135_v60 }
 0x17b   :  { %v140_v0 = vmul.f32 1.442695, %v139_v63  ;;  %v213_v12 = vpop.xlane.xlu1 %212 }
 0x17c   :  { %353 = vpow2.f32 %v128_v58 }
 0x17d   :  { %355 = vpow2.f32 %v132_v59 }
 0x17e   :  { %357 = vpow2.f32 %v136_v62 }
 0x17f   :  { %359 = vpow2.f32 %v140_v0  ;;  %v249_v14 = vpop.xlane.xlu1 %248 }
 0x180   :  { %361 = vlog2.f32 %v159_v5  ;;  %v295_v5 = vrot.slane %v594_v25, 4 }
 0x181   :  { %363 = vrcp.f32 %v195_v8 }
 0x182   :  { %365 = vrcp.f32 %v213_v12  ;;  %v296_v8 = vmax.f32 %v594_v25, %v295_v5 }
 0x189   :  { %v354_v3 = vpop.eup %353 }
 0x18a   :  { %v356_v4 = vpop.eup %355 }
 0x18b   :  { %v142_v6 = vadd.f32 %v356_v4, %v354_v3  ;;  %v358_v7 = vpop.eup %357 }
 0x18c   :  { %v360_v10 = vpop.eup %359 }
 0x18d   :  { %v143_v9 = vadd.f32 %v358_v7, %v142_v6  ;;  %v362_v15 = vpop.eup %361 }
 0x18e   :  { %v364_v16 = vpop.eup %363  ;;  %v161_v17 = vmul.f32 0.6931472, %v362_v15 }
 0x18f   :  { %v144_v11 = vadd.f32 %v360_v10, %v143_v9  ;;  %v366_v18 = vpop.eup %365 }
 0x190   :  { %v162_v30 = vadd.f32 %v161_v17, %v531_v24 }
 0x191   :  { %367 = vrcp.f32 %v144_v11 }
 0x192   :  { %369 = vrcp.f32 %v231_v13 }
 0x193   :  { %371 = vrcp.f32 %v249_v14 }
 0x19e   :  { %v368_v22 = vpop.eup %367 }
 0x19f   :  { %v370_v31 = vpop.eup %369  ;;  %v147_v2 = vmul.f32 %v368_v22, %v354_v3  ;;  %v148_v34 = vmul.f32 %v368_v22, %v356_v4  ;;  %v149_v41 = vmul.f32 %v368_v22, %v358_v7  ;;  %v150_v51 = vmul.f32 %v368_v22, %v360_v10 }
 0x1a0   :  { %v372_v46 = vpop.eup %371  ;;  %v297_v10 = vrot.slane %v296_v8, 2 }
 0x1a1   :  { %v254_v49 = vmul.f32 %v147_v2, %v605_v38  ;;  %v257_v50 = vmul.f32 %v148_v34, %v607_v39  ;;  %v261_v52 = vmul.f32 %v149_v41, %v609_v40  ;;  %v265_v59 = vmul.f32 %v150_v51, %v611_v1 }
 0x1a2   :  { %v298_v13 = vmax.f32 %v296_v8, %v297_v10 }
 0x1e4   :  { %v210_v19 = vpop.xlane.xlu1 %209  ;;  %v192_v20 = vpop.xlane.xlu0 %191 }
 0x1e5   :  { %v215_v23 = vmul.f32 %v366_v18, %v210_v19  ;;  %v197_v26 = vmul.f32 %v364_v16, %v192_v20  ;;  %v299_v16 = vrot.slane %v298_v13, 1 }
 0x1e7   :  { %v216_v28 = vsub.f32 0.0, %v215_v23  ;;  %v198_v29 = vsub.f32 0.0, %v197_v26  ;;  %v300_v19 = vmax.f32 %v298_v13, %v299_v16 }
 0x1e8   :  { %v166_v33 = vpop.xlane.xlu1 %165  ;;  %v228_v21 = vpop.xlane.xlu0 %227 }
 0x1e9   :  { %v217_v35 = vmul.f32 400.0, %v216_v28  ;;  %v199_v36 = vmul.f32 400.0, %v198_v29  ;;  %v167_v37 = vsub.f32 %v162_v30, %v166_v33  ;;  %v233_v32 = vmul.f32 %v370_v31, %v228_v21 }
 0x1eb   :  { %v234_v42 = vsub.f32 0.0, %v233_v32  ;;  %v271_v43 = vsel %vm270_vm6, %v167_v37, 0.0  ;;  %v255_v44 = vsub.f32 %v199_v36, %v167_v37  ;;  %v258_v45 = vsub.f32 %v217_v35, %v167_v37 }
 0x1ec   :  { %272 = vadd.xlane.f32.xlu1 %v271_v43  ;;  %v246_v47 = vpop.xlane.xlu0 %245 }
 0x1ed   :  { %v235_v24 = vmul.f32 400.0, %v234_v42  ;;  %v251_v48 = vmul.f32 %v372_v46, %v246_v47  ;;  %v256_v55 = vmul.f32 %v255_v44, %v254_v49  ;;  %v259_v56 = vmul.f32 %v258_v45, %v257_v50 }
 0x1ef   :  { %v262_v53 = vsub.f32 %v235_v24, %v167_v37  ;;  %v252_v54 = vsub.f32 0.0, %v251_v48  ;;  %v260_v61 = vadd.f32 %v259_v56, %v256_v55 }
 0x1f1   :  { %v263_v57 = vmul.f32 %v262_v53, %v261_v52  ;;  %v253_v58 = vmul.f32 400.0, %v252_v54 }
 0x1f3   :  { %v266_v60 = vsub.f32 %v253_v58, %v167_v37  ;;  %v264_v62 = vadd.f32 %v263_v57, %v260_v61 }
 0x1f5   :  { %v267_v63 = vmul.f32 %v266_v60, %v265_v59 }
 0x1f7   :  { %v268_v0 = vadd.f32 %v267_v63, %v264_v62 }
 0x1f9   :  { %v282_v38 = vsel %vm270_vm6, %v268_v0, 0.0 }
 0x1fa   :  { %283 = vadd.xlane.f32.xlu0 %v282_v38 }
 0x275   :  { %v273_v39 = vpop.xlane.xlu1 %272 }
 0x276   :  { %v274_v3 = vrot.slane %v273_v39, 4 }
 0x278   :  { %v275_v4 = vadd.f32 %v274_v3, %v273_v39 }
 0x27a   :  { %v276_v40 = vrot.slane %v275_v4, 2 }
 0x27c   :  { %v277_v6 = vadd.f32 %v276_v40, %v275_v4 }
 0x27e   :  { %v278_v7 = vrot.slane %v277_v6, 1 }
 0x280   :  { %v279_v9 = vadd.f32 %v278_v7, %v277_v6 }
 0x282   :  { %328 = vpush %v279_v9 }
 0x283   :  { %v284_v1 = vpop.xlane.xlu0 %283 }
 0x284   :  { %v285_v11 = vrot.slane %v284_v1, 4 }
 0x286   :  { %v286_v12 = vadd.f32 %v285_v11, %v284_v1 }
 0x288   :  { %v287_v14 = vrot.slane %v286_v12, 2 }
 0x28a   :  { %v288_v15 = vadd.f32 %v287_v14, %v286_v12 }
 0x28c   :  { %v289_v17 = vrot.slane %v288_v15, 1 }
 0x28e   :  { %v290_v18 = vadd.f32 %v289_v17, %v288_v15 }
 0x290   :  { %330 = vpush %v290_v18 }
 0x291   :  { %332 = vpush %v300_v19 }
 0x2b3   :  { %s329_s0 = spop %328 }
 0x2b4   :  { %v309_v23 = vstv %s329_s0 }
 0x2c1   :  { %s331_s30 = spop %330 }
 0x2c2   :  { %v307_v25 = vstv %s331_s30  ;;  %s333_s6 = spop %332 }
 0x2c3   :  { %v305_v20 = vstv %s333_s6 }
 0x2c4   :  { %v306_v22 = vsel %vm304_vm7, %v305_v20, 0.0 }
 0x2c5   :  { %v308_v26 = vsel %vm303_vm8, %v307_v25, %v306_v22 }
 0x2c6   :  { %v310_v28 = vsel %vm302_vm9, %v309_v23, %v308_v26 }
 0x2c7   :  { %311 = vst [vmem:[#allocation7] sm:$0xff] %v310_v28 }
 0x2c8   :  { %424 = shalt.err (!%p421_p0)
}
 0x2c9   :  { %321 = dma.vmem_to_hbm [thread:$0]  %s319_s8, 128, %s637_s5, [#allocation4]  }
 0x2ca   :  { %437 = dma.done.wait [#allocation4], 128  }
 0x2cb   :  { %438 = vsyncadd [#allocation4], 4294967168 }
 0x2cc   :  { %325 = vsyncpa [#allocation3], 1 }
 0x2cd   :  { %326 = vsyncpa [#allocation6], 1 }
 0x2ce   :  { %327 = vsyncpa [#allocation4], 1 }

</bundles_post_ra>
